<compile_context>
chip_gen: v7x
topology: tpu7x:2x2x1
jax: 0.10.0
libtpu: 0.0.40
codegen_flags: <defaults>
</compile_context>

<pallas_src>
import jax
import jax.numpy as jnp
from jax.experimental import pallas as pl
from jax.experimental.pallas import tpu as pltpu


def film_apply_kernel(gamma_ref, beta_ref, feat_ref, out_ref):
    """Memory-bound FiLM FMA on one [row_blk, col_blk] feature tile."""
    feat = feat_ref[...].astype(jnp.float32)   # f32 FMA lowers on v5e too
    out_ref[...] = (gamma_ref[...] * feat + beta_ref[...]).astype(out_ref.dtype)


def _sublane_unit(dtype):
    """Packed sublane tile: 8 for 4-byte, 16 for 2-byte, 32 for 1-byte dtypes."""
    itemsize = jnp.dtype(dtype).itemsize
    return max(8, 32 // max(itemsize, 1))


def _hw_budget():
    """(vmem_limit_bytes, row_cap, col_cap) derived from the TPU generation."""
    try:
        vmem_cap = pltpu.get_tpu_info().vmem_capacity_bytes
    except Exception:  # no info available -> assume the smallest (64 MiB) part
        vmem_cap = 64 * 1024 * 1024
    if vmem_cap <= 64 * 1024 * 1024:
        # v7x-class: 64 MiB VMEM, 3.2 TB/s HBM -> ~8 MiB tiles amortize the
        # ~0.35 us per-grid-step overhead; working set ~4x tile fits 48 MiB.
        return 48 * 1024 * 1024, 512, 4096
    # v5e / v6e: 128 MiB physical VMEM; ~2 MiB tiles are already near roofline.
    return 64 * 1024 * 1024, 256, 2048


def _pick_block(full, unit, cap):
    """Largest multiple of `unit` <= min(cap, full).  Falls back to the full
    extent only when the dim is smaller than one hardware tile (always legal).
    Non-divisible dims are handled by the pl.cdiv grid (trailing block clipped)."""
    if full <= unit:
        return full
    return max(unit, (min(cap, full) // unit) * unit)


def clfm_adapter(feat, z, w, bias):
    """gamma, beta = chunk(relu(z @ W^T + b), 2); return gamma*feat + beta."""
    B, C, H, W = feat.shape
    HW = H * W
    R = B * C

    # ---- FiLM MLP in plain XLA (hoisted out of the kernel; see header). -----
    gb = jnp.maximum(
        jnp.dot(z.astype(jnp.float32), w.astype(jnp.float32).T,
                preferred_element_type=jnp.float32)
        + bias.astype(jnp.float32)[None, :],
        0.0,
    )
    gamma_col = gb[:, :C].reshape(R, 1)     # gamma[b*C + c] = gb[b, c]
    beta_col = gb[:, C:].reshape(R, 1)
    feat2 = feat.reshape(R, HW)             # [B*C, H*W] lane-dense slab

    # ---- Streaming FiLM FMA over the slab (purely HBM-bandwidth bound). -----
    vmem_limit, row_cap, col_cap = _hw_budget()
    row_unit = _sublane_unit(feat.dtype)
    row_blk = _pick_block(R, row_unit, row_cap)
    col_blk = _pick_block(HW, 128, col_cap)

    # Guarantee >= 2 blocks along a "parallel" axis (v7x has 2 TensorCores);
    # prefer splitting rows, otherwise split the lane-dense column axis.
    if pl.cdiv(R, row_blk) * pl.cdiv(HW, col_blk) == 1:
        if row_blk >= 2 * row_unit:
            row_blk = ((row_blk // 2 + row_unit - 1) // row_unit) * row_unit
        elif col_blk >= 2 * 128:
            col_blk = ((col_blk // 2 + 127) // 128) * 128

    grid = (pl.cdiv(R, row_blk), pl.cdiv(HW, col_blk))   # columns innermost

    out2 = pl.pallas_call(
        film_apply_kernel,
        out_shape=jax.ShapeDtypeStruct((R, HW), feat.dtype),
        grid_spec=pltpu.PrefetchScalarGridSpec(
            num_scalar_prefetch=0,
            grid=grid,
            in_specs=[
                # gamma/beta block index is constant over the inner column loop,
                # so their tiny 1-lane DMAs are issued once per row block.
                pl.BlockSpec((row_blk, 1), lambda i, j: (i, 0)),         # gamma
                pl.BlockSpec((row_blk, 1), lambda i, j: (i, 0)),         # beta
                pl.BlockSpec((row_blk, col_blk), lambda i, j: (i, j)),   # feat
            ],
            out_specs=pl.BlockSpec((row_blk, col_blk), lambda i, j: (i, j)),
        ),
        compiler_params=pltpu.CompilerParams(
            dimension_semantics=("parallel", "parallel"),
            vmem_limit_bytes=vmem_limit,
        ),
    )(gamma_col, beta_col, feat2)

    return out2.reshape(B, C, H, W)


if __name__ == "__main__":
    key = jax.random.PRNGKey(0)
    B, C, H, W = 2, 4, 16, 16        # feature_channels = 4
    L = 32                           # latent_dim = 32

    k1, k2, k3, k4 = jax.random.split(key, 4)
    feat = jax.random.normal(k1, (B, C, H, W), dtype=jnp.float32)
    z = jax.random.normal(k2, (B, L), dtype=jnp.float32)
    # Deterministic synthetic params for nn.Linear(latent_dim, 2*feature_channels)
    w = jax.random.normal(k3, (2 * C, L), dtype=jnp.float32) * (1.0 / jnp.sqrt(L))
    bias = jax.random.normal(k4, (2 * C,), dtype=jnp.float32) * 0.1

    fn = jax.jit(clfm_adapter)
    out = jax.block_until_ready(fn(feat, z, w, bias))

    # Pure-JAX reference of the PyTorch forward pass.
    gb = jnp.maximum(z @ w.T + bias, 0.0)
    gamma, beta = gb[:, :C], gb[:, C:]
    ref = gamma[:, :, None, None] * feat + beta[:, :, None, None]

    assert out.shape == (B, C, H, W)
    assert out.dtype == feat.dtype
    assert jnp.allclose(out, ref, atol=1e-5, rtol=1e-5)
    print("KERNEL_OK")
</pallas_src>

<mosaic_0001>
module attributes {stable_mosaic.version = 11 : i64} {
  func.func @film_apply_kernel(%arg0: i32, %arg1: i32, %arg2: memref<8x1xf32, #tpu.memory_space<vmem>>, %arg3: memref<8x1xf32, #tpu.memory_space<vmem>>, %arg4: memref<8x128xf32, #tpu.memory_space<vmem>>, %arg5: memref<8x128xf32, #tpu.memory_space<vmem>>) attributes {dimension_semantics = [#tpu.dimension_semantics<parallel>, #tpu.dimension_semantics<parallel>], iteration_bounds = array<i64: 1, 2>, scalar_prefetch = 0 : i64, scratch_operands = 0 : i64, tpu.core_type = #tpu.core_type<tc>, window_params = [{transform_indices = @transform_0, window_bounds = array<i64: 8, 1>}, {transform_indices = @transform_1, window_bounds = array<i64: 8, 1>}, {transform_indices = @transform_2, window_bounds = array<i64: 8, 128>}, {transform_indices = @transform_3, window_bounds = array<i64: 8, 128>}]} {
    %c0 = arith.constant 0 : index
    %c0_0 = arith.constant 0 : index
    %0 = vector.load %arg4[%c0, %c0_0] : memref<8x128xf32, #tpu.memory_space<vmem>>, vector<8x128xf32>
    %c0_1 = arith.constant 0 : index
    %c0_2 = arith.constant 0 : index
    %1 = vector.load %arg2[%c0_1, %c0_2] : memref<8x1xf32, #tpu.memory_space<vmem>>, vector<8x1xf32>
    %2 = vector.broadcast %1 : vector<8x1xf32> to vector<8x128xf32>
    %3 = arith.mulf %2, %0 : vector<8x128xf32>
    %c0_3 = arith.constant 0 : index
    %c0_4 = arith.constant 0 : index
    %4 = vector.load %arg3[%c0_3, %c0_4] : memref<8x1xf32, #tpu.memory_space<vmem>>, vector<8x1xf32>
    %5 = vector.broadcast %4 : vector<8x1xf32> to vector<8x128xf32>
    %6 = arith.addf %3, %5 : vector<8x128xf32>
    %c0_5 = arith.constant 0 : index
    %c0_6 = arith.constant 0 : index
    %7 = vector.load %arg5[%c0_5, %c0_6] : memref<8x128xf32, #tpu.memory_space<vmem>>, vector<8x128xf32>
    tpu.vector_store %arg5[%c0_5, %c0_6], %6 {strides = array<i32>} : memref<8x128xf32, #tpu.memory_space<vmem>>, vector<8x128xf32>,
    return
  }
  func.func @transform_0(%arg0: i32, %arg1: i32) -> (i32, i32) {
    %c0_i32 = arith.constant 0 : i32
    %c0_i32_0 = arith.constant 0 : i32
    return %arg0, %c0_i32 : i32, i32
  }
  func.func @transform_1(%arg0: i32, %arg1: i32) -> (i32, i32) {
    %c0_i32 = arith.constant 0 : i32
    %c0_i32_0 = arith.constant 0 : i32
    return %arg0, %c0_i32 : i32, i32
  }
  func.func @transform_2(%arg0: i32, %arg1: i32) -> (i32, i32) {
    %c0_i32 = arith.constant 0 : i32
    return %arg0, %arg1 : i32, i32
  }
  func.func @transform_3(%arg0: i32, %arg1: i32) -> (i32, i32) {
    %c0_i32 = arith.constant 0 : i32
    return %arg0, %arg1 : i32, i32
  }
}

</mosaic_0001>

<bundles_post_ra>
// kernel: clfm_adapter.1
= control target key start
LH: loop header
LB: loop body
LE: loop exit
PB: predicated region body
PF: predicated region fallthrough
CT: control target
= control target key end

     0   :  { %s448_s12 = smov 0   ;;  %s450_s13 = smov 0   ;;  %s480_s0 = inlined_call_operand.vmem [shape: f32[8,1], index: 0, kind: input, shape index: {}]   ;;  %s481_s1 = inlined_call_operand.vmem [shape: f32[8,1], index: 1, kind: input, shape index: {}]   ;;  %s482_s2 = inlined_call_operand.vmem [shape: f32[8,256], index: 2, kind: input, shape index: {}]   ;;  %s483_s3 = inlined_call_operand.vmem [shape: f32[8,256], index: 3, kind: output, shape index: {}]  }
   0x1   :  { %s452_s14 = smov 0  }
   0x2 LB: > { %s22_s15 = sadd.s32 1, %s421_s13  ;;  %p372_p0 = scmp.ge.s32.totalorder %s425_s14, 1  ;;  %s425_s14 = sphi %s452_s14, %s13_s14   ;;  %s421_s13 = sphi %s450_s13, %s485_s13   ;;  %s417_s12 = sphi %s448_s12, %s484_s12  }
   0x3   : > { %p23_p1 = scmp.ge.s32.totalorder %s22_s15, 2  ;;  %p174_p2 = scmp.lt.s32.totalorder %s425_s14, 3 }
   0x5   : > { %s487_s15 = smov (%p23_p1, %s22_s15), 0  ;;  %p175_p3 = pnand %p372_p0, %p174_p2 }
   0x6   : > { %v237_v0 = vld [vmem:[%s480_s0] sm:$0xff] (!%p175_p3)  ;;  %v427_v1 = vmov (!%p175_p3), 0   ;;  %p222_p4 = scmp.lt.s32.totalorder (!%p175_p3), %s417_s12, 1 }
   0x7   : > { %178 = sbr.rel (%p175_p3) target bundleno = 143 (0x8f), region = 32  ;;  %402 = vset.pattern.permute.xlu0 (!%p175_p3), %v427_v1  ;;  %v244_v2 = vld [vmem:[%s481_s1] sm:$0xff] (!%p175_p3) }
   0x8   : > { %240 = vperm.xlu0 (!%p175_p3), %402, %v237_v0  }
   0xc   : > { %247 = vperm.xlu0 (!%p175_p3), %402, %v244_v2  }
   0xe   : > { %s489_s12 = smov (!%p222_p4, %s417_s12), 1 }
   0xf   : > { %s373_s20 = sshll.u32 %s489_s12, 3 }
  0x10   : > { %s227_s23 = scalar_lea.vmem %s482_s2, %s373_s20  ;;  %s235_s26 = scalar_lea.vmem %s483_s3, %s373_s20 }
  0x11   : > { %v236_v4 = vld [vmem:[%s227_s23] sm:$0xff] }
  0x87   : > { %v241_v3 = vpop.permute.xlu0 %240 }
  0x88   : > { %v243_v5 = vmul.f32 %v241_v3, %v236_v4 }
  0x8b   : > { %v248_v6 = vpop.permute.xlu0 %247 }
  0x8c   : > { %v250_v7 = vadd.f32 %v248_v6, %v243_v5 }
  0x8e   : > { %251 = vst [vmem:[%s235_s26] sm:$0xff] %v250_v7 }
  0x8f PF: > { %s13_s14 = sadd.s32 1, %s425_s14   ;;  %s484_s12 = smov %s421_s13 }
  0x90   : > { %p10_p5 = scmp.ge.s32.totalorder %s13_s14, 4   ;;  %s485_s13 = smov %s487_s15 }
  0x92   :  { %12 = sbr.rel (!%p10_p5) target bundleno = 2 (0x2), region = 68 }

</bundles_post_ra>
